<compile_context>
chip_gen: v7x
topology: tpu7x:2x2x1
jax: 0.10.0
libtpu: 0.0.40
codegen_flags: <defaults>
</compile_context>

<pallas_src>
import math
import functools

import jax
import jax.numpy as jnp
from jax.experimental import pallas as pl
from jax.experimental.pallas import tpu as pltpu


# ---------------------------------------------------------------------------
# Projection kernel: shared per-head Linear, y = x @ W + b
# ---------------------------------------------------------------------------
def _proj_kernel(x_ref, w_ref, b_ref, o_ref):
    # x_ref: (1, 1, ts, c)  per-(batch, head) input tile, already matmul_dtype
    # w_ref: (c, cm), b_ref: (1, cm)  shared across heads, already matmul_dtype
    # o_ref: (1, 1, ts, cm)
    y = jnp.dot(x_ref[0, 0], w_ref[...], preferred_element_type=jnp.float32)
    o_ref[0, 0] = (y + b_ref[...].astype(jnp.float32)).astype(o_ref.dtype)


def _project(xh, w, b, *, seq_tile):
    """xh: (B, heads, S, c) -> (B, heads, S, cm), dtype preserved."""
    B, H, S, c = xh.shape
    cm = w.shape[1]
    ts = seq_tile
    return pl.pallas_call(
        _proj_kernel,
        out_shape=jax.ShapeDtypeStruct((B, H, S, cm), xh.dtype),
        grid_spec=pltpu.PrefetchScalarGridSpec(
            num_scalar_prefetch=0,
            grid=(B, H, S // ts),
            in_specs=[
                pl.BlockSpec((1, 1, ts, c), lambda bi, hi, si: (bi, hi, si, 0)),
                pl.BlockSpec((c, cm), lambda bi, hi, si: (0, 0)),
                pl.BlockSpec((1, cm), lambda bi, hi, si: (0, 0)),
            ],
            out_specs=pl.BlockSpec((1, 1, ts, cm),
                                   lambda bi, hi, si: (bi, hi, si, 0)),
        ),
        compiler_params=pltpu.CompilerParams(
            dimension_semantics=("parallel", "parallel", "parallel")),
    )(xh, w, b)


# ---------------------------------------------------------------------------
# Flash attention kernel (all heads batched, online softmax over kv axis)
# ---------------------------------------------------------------------------
def _mha_attn_kernel(q_ref, k_ref, v_ref, o_ref, m_scr, l_scr, acc_scr,
                     *, matmul_dtype, approx_recip):
    heads, _, cm = acc_scr.shape
    ki = pl.program_id(2)

    @pl.when(ki == 0)
    def _init():
        m_scr[...] = jnp.full(m_scr.shape, -jnp.inf, jnp.float32)
        l_scr[...] = jnp.zeros(l_scr.shape, jnp.float32)
        acc_scr[...] = jnp.zeros(acc_scr.shape, jnp.float32)

    q = q_ref[0]     # (heads, tq, cm), matmul_dtype, 1/sqrt(cm) already folded
    k = k_ref[0]     # (heads, tk, cm)
    v = v_ref[0]     # (heads, tk, cm)

    # All heads in one batched dot_general; f32 accumulation on the MXU.
    s = jnp.einsum('hqc,hkc->hqk', q, k,
                   preferred_element_type=jnp.float32)          # (heads, tq, tk)

    m_prev = m_scr[...]                                          # (heads, tq, 1)
    m_new = jnp.maximum(m_prev, jnp.max(s, axis=-1, keepdims=True))
    alpha = jnp.exp(m_prev - m_new)                              # (heads, tq, 1)
    p = jnp.exp(s - m_new)                                       # (heads, tq, tk)
    l_scr[...] = alpha * l_scr[...] + jnp.sum(p, axis=-1, keepdims=True)
    pv = jnp.einsum('hqk,hkc->hqc', p.astype(matmul_dtype), v,
                    preferred_element_type=jnp.float32)          # (heads, tq, cm)
    acc_scr[...] = alpha * acc_scr[...] + pv                     # full-slab update
    m_scr[...] = m_new

    @pl.when(ki == pl.num_programs(2) - 1)
    def _finalize():
        # Deferred softmax normalization.  approx reciprocal (EUP) only on the
        # bf16 path; exact division on the f32 path for parity.
        inv = pl.reciprocal(l_scr[...], approx=approx_recip)     # (heads, tq, 1)
        out = acc_scr[...] * inv                                 # (heads, tq, cm)
        for h in range(heads):       # static; once per q-tile, not per kv step
            o_ref[0, :, h * cm:(h + 1) * cm] = out[h].astype(o_ref.dtype)

    # TODO(synk): bidirectional=True branch (softmax over dim=-2 and the
    # a_v^T @ q product) is not implemented in the kernel.


# ---------------------------------------------------------------------------
# Wrapper
# ---------------------------------------------------------------------------
def _tile(size, requested, target):
    if requested is not None:
        t = min(requested, size)
        assert size % t == 0, "tile size must divide the sequence length"
        return t
    t = min(size, target)
    return t if size % t == 0 else size   # TODO(synk): ragged tails need masking


def multi_head_attention(q, k, v, params, heads, *,
                         q_tile=None, kv_tile=None, proj_tile=None,
                         matmul_dtype=None, approx_recip=None,
                         vmem_limit_bytes=None):
    """Pallas MultiHeadAttention.forward(bidirectional=False).

    q/k/v: (B, S, D) in the module's original layout; returns (B, Sq, m_dim).
    """
    wq, bq, wk, bk, wv, bv = params
    B, Sq, _ = q.shape
    _, Sk, _ = k.shape
    cm = wq.shape[1]                 # m_dim // heads
    M = heads * cm
    if matmul_dtype is None:
        matmul_dtype = q.dtype
    if approx_recip is None:
        approx_recip = jnp.dtype(matmul_dtype) == jnp.dtype(jnp.bfloat16)

    scale = 1.0 / math.sqrt(cm)

    # Fold 1/sqrt(cm) into the Q projection and cast all params to matmul_dtype
    # in the WRAPPER (no per-step weight casts inside any kernel).
    wq_s = (wq * scale).astype(matmul_dtype)
    bq_s = (bq * scale).astype(matmul_dtype)
    wk_c, bk_c = wk.astype(matmul_dtype), bk.astype(matmul_dtype)
    wv_c, bv_c = wv.astype(matmul_dtype), bv.astype(matmul_dtype)

    # 'b s (h c) -> b h s c' head split, done once in plain XLA (cheap layout
    # op); activations cast here so the bf16 path halves HBM traffic.
    def split_heads(x):
        Bx, Sx, Dx = x.shape
        c = Dx // heads
        return (x.reshape(Bx, Sx, heads, c)
                 .transpose(0, 2, 1, 3)
                 .astype(matmul_dtype))

    qh, kh, vh = split_heads(q), split_heads(k), split_heads(v)

    # Projections as a separate small pallas_call (computed exactly once per
    # token, independent of the attention tiling).
    tsq = _tile(Sq, proj_tile, 512)
    tsk = _tile(Sk, proj_tile, 512)
    qp = _project(qh, wq_s, bq_s, seq_tile=tsq)   # (B, heads, Sq, cm)
    kp = _project(kh, wk_c, bk_c, seq_tile=tsk)   # (B, heads, Sk, cm)
    vp = _project(vh, wv_c, bv_c, seq_tile=tsk)   # (B, heads, Sk, cm)

    # Attention tiles (see generation tuning notes in the header).
    tq = _tile(Sq, q_tile, 256)
    tk = _tile(Sk, kv_tile, 256)

    kernel = functools.partial(_mha_attn_kernel,
                               matmul_dtype=matmul_dtype,
                               approx_recip=approx_recip)

    grid = (B, Sq // tq, Sk // tk)   # kv (reduction) axis last, "arbitrary"
    return pl.pallas_call(
        kernel,
        out_shape=jax.ShapeDtypeStruct((B, Sq, M), q.dtype),
        grid_spec=pltpu.PrefetchScalarGridSpec(
            num_scalar_prefetch=0,
            grid=grid,
            in_specs=[
                pl.BlockSpec((1, heads, tq, cm), lambda b, qi, ki: (b, 0, qi, 0)),
                pl.BlockSpec((1, heads, tk, cm), lambda b, qi, ki: (b, 0, ki, 0)),
                pl.BlockSpec((1, heads, tk, cm), lambda b, qi, ki: (b, 0, ki, 0)),
            ],
            out_specs=pl.BlockSpec((1, tq, M), lambda b, qi, ki: (b, qi, 0)),
            scratch_shapes=[
                pltpu.VMEM((heads, tq, 1), jnp.float32),    # running max
                pltpu.VMEM((heads, tq, 1), jnp.float32),    # running sum
                pltpu.VMEM((heads, tq, cm), jnp.float32),   # output accumulator
            ]),
        compiler_params=pltpu.CompilerParams(
            dimension_semantics=("parallel", "parallel", "arbitrary"),
            vmem_limit_bytes=vmem_limit_bytes),
    )(qp, kp, vp)


# ---------------------------------------------------------------------------
# Pure-JAX reference mirroring the PyTorch forward (bidirectional=False)
# ---------------------------------------------------------------------------
def _reference(q, k, v, params, heads):
    wq, bq, wk, bk, wv, bv = params
    B, Sq, q_dim = q.shape
    _, Sk, k_dim = k.shape
    _, _, v_dim = v.shape
    cq, ck, cv = q_dim // heads, k_dim // heads, v_dim // heads
    qh = q.reshape(B, Sq, heads, cq).transpose(0, 2, 1, 3)
    kh = k.reshape(B, Sk, heads, ck).transpose(0, 2, 1, 3)
    vh = v.reshape(B, Sk, heads, cv).transpose(0, 2, 1, 3)
    qp = jnp.einsum('bhqc,cd->bhqd', qh, wq) + bq[0]
    kp = jnp.einsum('bhkc,cd->bhkd', kh, wk) + bk[0]
    vp = jnp.einsum('bhkc,cd->bhkd', vh, wv) + bv[0]
    a = jnp.einsum('bhqc,bhkc->bhqk', qp, kp) / math.sqrt(kp.shape[-1])
    a_q = jax.nn.softmax(a, axis=-1)
    q_new = jnp.einsum('bhqk,bhkc->bhqc', a_q, vp)
    return q_new.transpose(0, 2, 1, 3).reshape(B, Sq, heads * kp.shape[-1])


if __name__ == "__main__":
    key = jax.random.PRNGKey(0)
    keys = jax.random.split(key, 10)

    heads = 2
    q_dim = 32                  # module defaults: k_dim = v_dim = m_dim = q_dim
    cq = q_dim // heads
    cm = q_dim // heads

    # Deterministic Linear params (stored as (in, out); y = x @ W + b).
    bound = 1.0 / math.sqrt(cq)
    wq = jax.random.uniform(keys[0], (cq, cm), jnp.float32, -bound, bound)
    bq = jax.random.uniform(keys[1], (1, cm), jnp.float32, -bound, bound)
    wk = jax.random.uniform(keys[2], (cq, cm), jnp.float32, -bound, bound)
    bk = jax.random.uniform(keys[3], (1, cm), jnp.float32, -bound, bound)
    wv = jax.random.uniform(keys[4], (cq, cm), jnp.float32, -bound, bound)
    bv = jax.random.uniform(keys[5], (1, cm), jnp.float32, -bound, bound)
    params = (wq, bq, wk, bk, wv, bv)

    # --- case 1: self-attention (forward(q) with k=None, v=None), single tile.
    B, S = 2, 8
    x = jax.random.normal(keys[6], (B, S, q_dim), dtype=jnp.float32)
    out1 = jax.block_until_ready(multi_head_attention(x, x, x, params, heads))
    ref1 = _reference(x, x, x, params, heads)
    assert out1.shape == (B, S, heads * cm)
    assert jnp.allclose(out1, ref1, atol=5e-3, rtol=5e-3), "case1 mismatch"

    # --- case 2: distinct q/k/v, tiled q and kv axes (exercises online softmax).
    B2, Sq2, Sk2 = 2, 16, 16
    q2 = jax.random.normal(keys[7], (B2, Sq2, q_dim), dtype=jnp.float32)
    k2 = jax.random.normal(keys[8], (B2, Sk2, q_dim), dtype=jnp.float32)
    v2 = jax.random.normal(keys[9], (B2, Sk2, q_dim), dtype=jnp.float32)
    out2 = jax.block_until_ready(
        multi_head_attention(q2, k2, v2, params, heads, q_tile=8, kv_tile=8))
    ref2 = _reference(q2, k2, v2, params, heads)
    assert jnp.allclose(out2, ref2, atol=5e-3, rtol=5e-3), "case2 mismatch"

    # --- case 3: bf16 matmul operands, f32 accumulation (MXU fast path).
    out3 = jax.block_until_ready(
        multi_head_attention(x, x, x, params, heads, matmul_dtype=jnp.bfloat16))
    assert jnp.allclose(out3, ref1, atol=3e-2, rtol=3e-2), "case3 mismatch"

    print("KERNEL_OK")
</pallas_src>

<mosaic_0001>
module attributes {stable_mosaic.version = 11 : i64} {
  func.func @_proj_kernel(%arg0: i32, %arg1: i32, %arg2: i32, %arg3: memref<1x1x8x16xf32, #tpu.memory_space<vmem>>, %arg4: memref<16x16xf32, #tpu.memory_space<vmem>>, %arg5: memref<1x16xf32, #tpu.memory_space<vmem>>, %arg6: memref<1x1x8x16xf32, #tpu.memory_space<vmem>>) attributes {dimension_semantics = [#tpu.dimension_semantics<parallel>, #tpu.dimension_semantics<parallel>, #tpu.dimension_semantics<parallel>], iteration_bounds = array<i64: 2, 2, 1>, scalar_prefetch = 0 : i64, scratch_operands = 0 : i64, tpu.core_type = #tpu.core_type<tc>, window_params = [{transform_indices = @transform_0, window_bounds = array<i64: 1, 1, 8, 16>}, {pipeline_mode = #tpu.pipeline_mode<synchronous>, transform_indices = @transform_1, window_bounds = array<i64: 16, 16>}, {pipeline_mode = #tpu.pipeline_mode<synchronous>, transform_indices = @transform_2, window_bounds = array<i64: 1, 16>}, {transform_indices = @transform_3, window_bounds = array<i64: 1, 1, 8, 16>}]} {
    %c0 = arith.constant 0 : index
    %c0_0 = arith.constant 0 : index
    %c0_1 = arith.constant 0 : index
    %c0_2 = arith.constant 0 : index
    %0 = vector.load %arg3[%c0, %c0_0, %c0_1, %c0_2] : memref<1x1x8x16xf32, #tpu.memory_space<vmem>>, vector<1x1x8x16xf32>
    %1 = vector.shape_cast %0 : vector<1x1x8x16xf32> to vector<8x16xf32>
    %c0_3 = arith.constant 0 : index
    %c0_4 = arith.constant 0 : index
    %2 = vector.load %arg4[%c0_3, %c0_4] : memref<16x16xf32, #tpu.memory_space<vmem>>, vector<16x16xf32>
    %cst = arith.constant dense<0.000000e+00> : vector<8x16xf32>
    %3 = tpu.matmul %1, %2, %cst {dimension_numbers = #tpu.dot_dimension_numbers<[1], [0], [0], [1], [0, 0, 1, 1], [], []>} : vector<8x16xf32>, vector<16x16xf32>, vector<8x16xf32> -> vector<8x16xf32>
    %c0_5 = arith.constant 0 : index
    %c0_6 = arith.constant 0 : index
    %4 = vector.load %arg5[%c0_5, %c0_6] : memref<1x16xf32, #tpu.memory_space<vmem>>, vector<1x16xf32>
    %5 = vector.broadcast %4 : vector<1x16xf32> to vector<8x16xf32>
    %6 = arith.addf %3, %5 : vector<8x16xf32>
    %c0_7 = arith.constant 0 : index
    %c0_8 = arith.constant 0 : index
    %c0_9 = arith.constant 0 : index
    %c0_10 = arith.constant 0 : index
    %7 = vector.load %arg6[%c0_7, %c0_8, %c0_9, %c0_10] : memref<1x1x8x16xf32, #tpu.memory_space<vmem>>, vector<1x1x8x16xf32>
    %8 = vector.shape_cast %7 : vector<1x1x8x16xf32> to vector<8x16xf32>
    %9 = vector.shape_cast %6 : vector<8x16xf32> to vector<1x1x8x16xf32>
    tpu.vector_store %arg6[%c0_7, %c0_8, %c0_9, %c0_10], %9 {strides = array<i32>} : memref<1x1x8x16xf32, #tpu.memory_space<vmem>>, vector<1x1x8x16xf32>,
    return
  }
  func.func @transform_0(%arg0: i32, %arg1: i32, %arg2: i32) -> (i32, i32, i32, i32) {
    %c0_i32 = arith.constant 0 : i32
    %c0_i32_0 = arith.constant 0 : i32
    return %arg0, %arg1, %arg2, %c0_i32 : i32, i32, i32, i32
  }
  func.func @transform_1(%arg0: i32, %arg1: i32, %arg2: i32) -> (i32, i32) {
    %c0_i32 = arith.constant 0 : i32
    %c0_i32_0 = arith.constant 0 : i32
    %c0_i32_1 = arith.constant 0 : i32
    return %c0_i32, %c0_i32_0 : i32, i32
  }
  func.func @transform_2(%arg0: i32, %arg1: i32, %arg2: i32) -> (i32, i32) {
    %c0_i32 = arith.constant 0 : i32
    %c0_i32_0 = arith.constant 0 : i32
    %c0_i32_1 = arith.constant 0 : i32
    return %c0_i32, %c0_i32_0 : i32, i32
  }
  func.func @transform_3(%arg0: i32, %arg1: i32, %arg2: i32) -> (i32, i32, i32, i32) {
    %c0_i32 = arith.constant 0 : i32
    %c0_i32_0 = arith.constant 0 : i32
    return %arg0, %arg1, %arg2, %c0_i32 : i32, i32, i32, i32
  }
}

</mosaic_0001>

<bundles_post_ra>
// kernel: tpu_custom_call.1
= control target key start
LH: loop header
LB: loop body
LE: loop exit
PB: predicated region body
PF: predicated region fallthrough
CT: control target
= control target key end

     0   :  { %s990_s0 = inlined_call_operand.hbm [shape: f32[2,2,8,16], index: 0, kind: input, shape index: {}]   ;;  %s991_s1 = inlined_call_operand.hbm [shape: f32[16,16], index: 1, kind: input, shape index: {}]   ;;  %s992_s2 = inlined_call_operand.vmem [shape: f32[1,16], index: 2, kind: input, shape index: {}]   ;;  %s993_s3 = inlined_call_operand.hbm [shape: f32[2,2,8,16], index: 3, kind: output, shape index: {}]  }
   0x1   :  { %1001 = sst [smem:[#allocation14_spill]] %s991_s1 }
   0x2   :  { %8 = vsyncpa [#allocation3], 0 }
   0x3   :  { %10 = vsyncpa [#allocation3 + $0x1], 0 }
   0x4   :  { %11 = vsyncpa [#allocation6], 0 }
   0x5   :  { %12 = vsyncpa [#allocation4], 0 }
   0x6   :  { %14 = vsyncpa [#allocation4 + $0x1], 0  ;;  %s749_s12 = smov 0   ;;  %s751_s13 = smov 0  }
   0x7   :  { %s753_s14 = smov 0   ;;  %s755_s15 = smov 0  }
   0x8   :  { %s757_s16 = smov 0   ;;  %s759_s17 = smov 0  }
   0x9   :  { %s761_s18 = smov 0   ;;  %s763_s19 = smov 0  }
   0xa LB: > { %1002 = sst [smem:[#allocation11_spill]] %s691_s12  ;;  %s433_s20 = sadd.s32 4294967295, %s719_s19   ;;  %s719_s19 = sphi %s763_s19, %s20_s19   ;;  %s715_s18 = sphi %s761_s18, %s1029_s18   ;;  %s711_s17 = sphi %s759_s17, %s1028_s17   ;;  %s707_s16 = sphi %s757_s16, %s1027_s16   ;;  %s703_s15 = sphi %s755_s15, %s1026_s15   ;;  %s699_s14 = sphi %s753_s14, %s1025_s14   ;;  %s695_s13 = sphi %s751_s13, %s1024_s13   ;;  %s691_s12 = sphi %s749_s12, %s1023_s12  }
   0xb   : > { %s434_s21 = sadd.s32 4294967294, %s719_s19   ;;  %p63_p0 = scmp.ne.s32.totalorder %s695_s13, %s691_s12 }
   0xc   : > { %p793_p1 = scmp.eq.s32.totalorder %s433_s20, 0  ;;  %p797_p2 = scmp.eq.s32.totalorder %s433_s20, 3 }
   0xd   : > { %p139_p3 = scmp.eq.s32.totalorder %s434_s21, 3  ;;  %p435_p5 = scmp.ge.s32.totalorder %s719_s19, 1 }
   0xe   : > { %s1003_s22 = scalar_select %p793_p1, 1, 0 }
   0xf   : > { %s1004_s23 = scalar_select %p797_p2, 1, 0 }
  0x10   : > { %p803_p4 = por %p793_p1, %p63_p0  ;;  %p808_p6 = por %p139_p3, %p63_p0 }
  0x11   : > { %p146_p7 = scmp.lt.s32.totalorder %s719_s19, 5  ;;  %s721_s27 = smov [#allocation5]  }
  0x12   : > { %s1005_s24 = scalar_select %p803_p4, 1, 0 }
  0x13   : > { %s1006_s25 = scalar_select %p808_p6, 1, 0 }
  0x14   : > { %p813_p8 = pnand %p435_p5, %p146_p7  ;;  %s158_s28 = sshll.u32 %s721_s27, 4  ;;  %s159_s28 = int_to_ptr.vmem [resolvable:$true] %s158_s28 }
  0x15   : > { %1007 = sst [smem:[#allocation12_spill]] %s1006_s25  ;;  %s1010_s1 = sld [smem:[#allocation14_spill]] }
  0x16   : > { %s1008_s26 = scalar_select %p813_p8, 1, 0 }
  0x17   : > { %p473_p9 = pneg %p813_p8 }
  0x19   : > { %p821_p10 = pnand %p473_p9, %p793_p1 }
  0x1b   : > { %s559_s5 = scalar_lea.hbm %s1010_s1, 256  ;;  %p561_p12 = pneg %p821_p10 }
  0x1c   : > { %p560_p11 = scmp.ne.s32.totalorder %s1010_s1, %s559_s5  ;;  %p566_p3 = scmp.lt.u32.totalorder %s559_s5, %s1010_s1 }
  0x1e   : > { %p562_p13 = pnand %p561_p12, %p560_p11 }
  0x20   : > { %p563_p0 = pneg %p562_p13 }
  0x22   : > { %p568_p5 = pnand %p566_p3, %p563_p0 }
  0x24   : > { %571 = shalt.err (!%p568_p5)
}
  0x25   : > { %s572_s10 = scalar_lea.vmem %s159_s28, 256  ;;  %p580_p1 = scmp.lt.s32.totalorder %s159_s28, %s159_s28 }
  0x26   : > { %p573_p7 = scmp.ne.s32.totalorder %s159_s28, %s572_s10  ;;  %p581_p4 = scmp.lt.s32.totalorder %s572_s10, %s572_s10 }
  0x28   : > { %p575_p9 = pnand %p573_p7, %p561_p12  ;;  %p582_p8 = por %p581_p4, %p580_p1 }
  0x2a   : > { %p576_p6 = pneg %p575_p9 }
  0x2c   : > { %p583_p2 = pnand %p582_p8, %p576_p6 }
  0x2e   : > { %586 = shalt.err (!%p583_p2)
}
  0x2f   : > { %s722_s11 = smov 128   ;;  %s723_s20 = smov 8  }
  0x30   : > { %476 = dma.hbm_to_vmem [thread:$0]  (!%p821_p10), %s1010_s1, 256, %s159_s28, [#allocation6], %s722_s11, %s722_s11, %s723_s20  }
  0x31   : > { %s35_s30 = sadd.s32 1, %s711_s17  ;;  %s39_s4 = sadd.s32 1, %s715_s18 }
  0x32   : > { %p37_p1 = scmp.ge.s32.totalorder %s35_s30, 2  ;;  %s50_s5 = sadd.s32 1, %s699_s14 }
  0x33   : > { %p57_p2 = scmp.ne.s32.totalorder %s699_s14, %s695_s13  ;;  %p58_p4 = scmp.eq.s32.totalorder %s719_s19, 0 }
  0x34   : > { %s1031_s30 = smov (%p37_p1, %s35_s30), 0  ;;  %s1033_s4 = smov (!%p37_p1, %s39_s4), %s715_s18 }
  0x35   : > { %1011 = sst [smem:[#allocation13_spill]] %s1031_s30  ;;  %s44_s6 = ssub.s32 %s711_s17, %s1031_s30 }
  0x36   : > { %p41_p6 = scmp.ge.s32.totalorder %s1033_s4, 2  ;;  %p1012_p8 = scmp.ne.s32.totalorder %s1004_s23, 0 }
  0x37   : > { %p858_p10 = por %p58_p4, %p57_p2  ;;  %p486_p12 = scmp.lt.s32.totalorder %s719_s19, 4 }
  0x38   : > { %p854_p11 = por %p1012_p8, %p57_p2  ;;  %s1035_s4 = smov (%p41_p6, %s1033_s4), 0 }
  0x39   : > { %s175_s7 = sand.u32 1, %s699_s14   ;;  %s439_s8 = sshll.u32 %s715_s18, 1 }
  0x3a   : > { %s43_s9 = ssub.s32 %s715_s18, %s1035_s4  ;;  %s438_s11 = sshll.u32 %s175_s7, 3 }
  0x3b   : > { %s45_s10 = sor.u32 %s44_s6, %s43_s9  ;;  %s185_s23 = sadd.s32 %s711_s17, %s439_s8 }
  0x3c   : > { %p48_p13 = scmp.eq.s32.totalorder %s45_s10, 0  ;;  %s179_s20 = scalar_lea.vmem [#allocation2], %s438_s11 }
  0x3d   : > { %s189_s21 = sshll.u32 %s179_s20, 4  ;;  %s440_s1 = sshll.u32 %s185_s23, 7  ;;  %s873_s21 = int_to_ptr.vmem [resolvable:$true] %s189_s21 }
  0x3e   : > { %s871_s27 = scalar_select %p48_p13, %s699_s14, %s50_s5  }
  0x3f   : > { %s878_s12 = scalar_lea.hbm %s990_s0, %s440_s1  ;;  %p884_p0 = pnand %p486_p12, %p858_p10 }
  0x40   : > { %s176_s5 = scalar_lea.sflag [#allocation3], %s175_s7  ;;  %s587_s8 = scalar_lea.hbm %s878_s12, 128 }
  0x41   : > { %p588_p3 = scmp.ne.s32.totalorder %s878_s12, %s587_s8  ;;  %p589_p5 = pneg %p884_p0 }
  0x42   : > { %s592_s30 = scalar_lea.hbm %s990_s0, 512  ;;  %p593_p1 = scmp.lt.u32.totalorder %s878_s12, %s990_s0 }
  0x43   : > { %p590_p7 = pnand %p589_p5, %p588_p3  ;;  %p594_p2 = scmp.lt.u32.totalorder %s592_s30, %s587_s8 }
  0x44   : > { %p596_p6 = scmp.lt.u32.totalorder %s587_s8, %s878_s12 }
  0x45   : > { %p591_p9 = pneg %p590_p7  ;;  %p595_p4 = por %p594_p2, %p593_p1 }
  0x47   : > { %p597_p8 = por %p596_p6, %p595_p4 }
  0x49   : > { %p598_p10 = pnand %p597_p8, %p591_p9 }
  0x4b   : > { %601 = shalt.err (!%p598_p10)
}
  0x4c   : > { %s602_s7 = scalar_lea.vmem %s873_s21, 128  ;;  %s724_s10 = smov [#allocation2]  }
  0x4d   : > { %p603_p12 = scmp.ne.s32.totalorder %s873_s21, %s602_s7  ;;  %s607_s11 = sshll.u32 %s724_s10, 4  ;;  %s608_s11 = int_to_ptr.vmem [resolvable:$false] %s607_s11 }
  0x4e   : > { %s609_s23 = scalar_lea.vmem %s608_s11, 256  ;;  %p610_p7 = scmp.lt.s32.totalorder %s873_s21, %s608_s11 }
  0x4f   : > { %p605_p13 = pnand %p603_p12, %p589_p5  ;;  %p611_p1 = scmp.lt.s32.totalorder %s609_s23, %s602_s7 }
  0x51   : > { %p606_p3 = pneg %p605_p13  ;;  %p612_p2 = por %p611_p1, %p610_p7 }
  0x53   : > { %p613_p4 = pnand %p612_p2, %p606_p3 }
  0x55   : > { %616 = shalt.err (!%p613_p4)
}
  0x56   : > { %480 = dma.hbm_to_vmem [thread:$0]  (!%p884_p0), %s878_s12, 128, %s873_s21, %s176_s5  }
  0x57   : > { %p1016_p9 = scmp.ne.s32.totalorder %s1008_s26, 0 }
  0x58   : > { %s916_s20 = sand.u32 (!%p1016_p9), 1, %s695_s13   ;;  %p1017_p5 = scmp.ne.s32.totalorder (!%p1016_p9), %s1005_s24, 0 }
  0x59   : > { %198 = sbr.rel (%p1016_p9) target bundleno = 335 (0x14f), region = 32  ;;  %s442_s8 = sshll.u32 (!%p1016_p9), %s916_s20, 3 }
  0x5a   : > { %s201_s1 = scalar_lea.sflag (!%p1016_p9), [#allocation3], %s916_s20  ;;  %s204_s25 = scalar_lea.vmem (!%p1016_p9), [#allocation2], %s442_s8 }
  0x60   : > { %678 = dma.done.wait (%p1017_p5), %s201_s1, 128  }
  0x61   : > { %680 = vsyncadd (%p1017_p5), %s201_s1, 4294967168  ;;  %p1018_p6 = scmp.ne.s32.totalorder %s1003_s22, 0 }
  0x63   : > { %682 = dma.done.wait (%p1018_p6), [#allocation6], 256  }
  0x64   : > { %684 = vsyncadd (%p1018_p6), [#allocation6], 4294967040  ;;  %v725_v0 = vmov 0.0|0.0   ;;  %vm726_vm0 = vmmov 0   ;;  %v727_v1 = vmov 0.0   ;;  %v232_v2 = vld [vmem:[#allocation5] sm:$0xff] }
  0x65   : > { %462 = vmatprep.subr.bf16.mxu0 %v725_v0  ;;  %459 = vmatprep.mubr.msk.f32.mxu0 %vm726_vm0, %v727_v1  ;;  %v233_v3 = vld [vmem:[#allocation5 + $0x8] sm:$0xff]  ;;  %v231_v5 = vld [vmem:[%s204_s25] sm:$0xff]  ;;  %vm241_vm1 = vcmask 130048   ;;  %s448_s12 = sshll.u32 %s707_s16, 1  ;;  %s230_s6 = scalar_lea.vmem [#allocation7], %s442_s8 }
  0x66   : > { %v463_v4 = vpack.c.bf16 %v233_v3, %v232_v2  ;;  %s329_s24 = sadd.s32 %s703_s15, %s448_s12  ;;  %v445_v6 = vld [vmem:[%s992_s2] ss:$0 sm:$0xff]  ;;  %s333_s5 = sshll.u32 %s230_s6, 4  ;;  %s938_s5 = int_to_ptr.vmem [resolvable:$true] %s333_s5 }
  0x67   : > { %s449_s21 = sshll.u32 %s329_s24, 7  ;;  %s317_s15 = scalar_lea.sflag [#allocation4], %s916_s20 }
  0x68   : > { %464 = vmatpush3.bf16.msra.mxu0 %v463_v4  ;;  %s936_s9 = scalar_lea.hbm %s993_s3, %s449_s21  ;;  %s617_s16 = scalar_lea.vmem %s938_s5, 128 }
  0x69   : > { %p618_p0 = scmp.ne.s32.totalorder %s938_s5, %s617_s16  ;;  %s728_s7 = smov [#allocation7]  }
  0x6a   : > { %s621_s10 = sshll.u32 %s728_s7, 4  ;;  %s622_s10 = int_to_ptr.vmem [resolvable:$false] %s621_s10 }
  0x6b   : > { %460 = vmatmul.mubr.msk.f32.vlgmr.msra.gmra.mrb[0].mxu0 %vm241_vm1, %v231_v5  ;;  %p619_p8 = pnand %p618_p0, %p854_p11  ;;  %s623_s11 = scalar_lea.vmem %s622_s10, 256 }
  0x6c   : > { %p624_p12 = scmp.lt.s32.totalorder %s938_s5, %s622_s10  ;;  %p625_p13 = scmp.lt.s32.totalorder %s623_s11, %s617_s16 }
  0x6d   : > { %p620_p10 = pneg %p619_p8 }
  0x6e   : > { %p626_p3 = por %p625_p13, %p624_p12 }
  0x70   : > { %p627_p7 = pnand %p626_p3, %p620_p10 }
 0x13e   : > { %v311_v7 = vpop.f32.mrb[0].mxu0 }
 0x13f   : > { %v312_v8 = vadd.f32 %v445_v6, %v311_v7  ;;  %v461_v9 = vpop.f32.mrb[1].mxu0 }
 0x141   : > { %315 = vst.msk [vmem:[%s230_s6] sm:$0xff] %vm241_vm1, %v312_v8 }
 0x142   : > { %630 = shalt.err (!%p627_p7)
}
 0x143   : > { %s631_s23 = scalar_lea.hbm %s936_s9, 128  ;;  %s635_s1 = scalar_lea.hbm %s993_s3, 512 }
 0x144   : > { %p632_p1 = scmp.ne.s32.totalorder %s936_s9, %s631_s23  ;;  %p636_p9 = scmp.lt.u32.totalorder %s936_s9, %s993_s3 }
 0x145   : > { %p637_p5 = scmp.lt.u32.totalorder %s635_s1, %s631_s23  ;;  %p639_p0 = scmp.lt.u32.totalorder %s631_s23, %s936_s9 }
 0x146   : > { %p633_p2 = pnand %p632_p1, %p854_p11 }
 0x147   : > { %p638_p6 = por %p637_p5, %p636_p9 }
 0x148   : > { %p634_p4 = pneg %p633_p2 }
 0x149   : > { %p640_p8 = por %p639_p0, %p638_p6 }
 0x14b   : > { %p641_p10 = pnand %p640_p8, %p634_p4 }
 0x14d   : > { %644 = shalt.err (!%p641_p10)
}
 0x14e   : > { %471 = dma.vmem_to_hbm [thread:$0]  (%p854_p11), %s938_s5, 128, %s936_s9, %s317_s15  }
 0x14f PF: > { %s1019_s24 = sld [smem:[#allocation11_spill]]  ;;  %s1020_s22 = sld [smem:[#allocation12_spill]] }
 0x150   : > { %p488_p12 = scmp.ge.s32.totalorder %s719_s19, 2 }
 0x155   : > { %s345_s26 = sand.u32 1, %s1019_s24   ;;  %p1021_p13 = scmp.ne.s32.totalorder %s1020_s22, 0 }
 0x156   : > { %s346_s21 = scalar_lea.sflag [#allocation4], %s345_s26 }
 0x157   : > { %p482_p3 = pnand %p488_p12, %p1021_p13 }
 0x159   : > { %686 = dma.done.wait (!%p482_p3), %s346_s21, 128  }
 0x15a   : > { %688 = vsyncadd (!%p482_p3), %s346_s21, 4294967168  ;;  %s20_s19 = sadd.s32 1, %s719_s19   ;;  %s1022_s29 = sld [smem:[#allocation13_spill]] }
 0x15b   : > { %p17_p7 = scmp.ge.s32.totalorder %s20_s19, 6   ;;  %s1023_s12 = smov %s695_s13 }
 0x15c   : > { %s1024_s13 = smov %s699_s14  ;;  %s1025_s14 = smov %s871_s27 }
 0x15d   : > { %s1026_s15 = smov %s711_s17  ;;  %s1027_s16 = smov %s715_s18 }
 0x15e   : > { %s1029_s18 = smov %s1035_s4  ;;  %19 = sbr.rel (!%p17_p7) target bundleno = 10 (0xa), region = 81 }
 0x160   : > { %s1028_s17 = smov %s1022_s29 }
 0x165   :  { %351 = vsyncpa [#allocation3], 1 }
 0x166   :  { %353 = vsyncpa [#allocation3 + $0x1], 1 }
 0x167   :  { %354 = vsyncpa [#allocation6], 1 }
 0x168   :  { %355 = vsyncpa [#allocation4], 1 }
 0x169   :  { %357 = vsyncpa [#allocation4 + $0x1], 1 }

</bundles_post_ra>
